<compile_context>
chip_gen: v5e
topology: v5e:2x2
jax: 0.10.0
libtpu: 0.0.40
codegen_flags: <defaults>
</compile_context>

<pallas_src>
import jax
import jax.numpy as jnp
from jax.experimental import pallas as pl
from jax.experimental.pallas import tpu as pltpu

# Deterministic module parameters (plain Python floats; no device arrays at import).
P1 = 0.00019073866596602799
P2 = 0.04884512388490066
P3 = 1.331886974861104e-05
P4 = 0.062206521382228645
P5 = 0.0873
P6 = 0.0089
P7 = 0.0052
P8 = 0.0316

_LANES = 128  # lane width of the vreg; batch is padded to a multiple of this.


def _lambda_kernel(rates_ref, y_ref, o_ref):
    """Gating-kinetics RHS on a sublane/lane-dense state tile.

    rates_ref: (4,)                  f32 SMEM -- [k1, k1+k2, k4, k3+k4]
    y_ref:     (2, block_rows, 128)  f32 VMEM -- slab 0 = a's, slab 1 = r's
    o_ref:     (2, block_rows, 128)  f32 VMEM -- slab 0 = dadt, slab 1 = drdt
    """
    k1 = rates_ref[0]       # gain rate for a
    ks_a = rates_ref[1]     # k1 + k2
    k4 = rates_ref[2]       # gain rate for r
    ks_r = rates_ref[3]     # k3 + k4
    # k_gain*(1-y) - k_loss*y == k_gain - (k_gain + k_loss)*y  (one FMA per element)
    o_ref[0] = k1 - ks_a * y_ref[0]
    o_ref[1] = k4 - ks_r * y_ref[1]


def _rates_from_voltage(v):
    """Scalar rate constants k1..k4 from membrane voltage v (computed once)."""
    v = jnp.asarray(v, dtype=jnp.float32)
    k1 = P1 * jnp.exp(P2 * v)
    k2 = P3 * jnp.exp(-P4 * v)
    k3 = P5 * jnp.exp(P6 * v)
    k4 = P7 * jnp.exp(-P8 * v)
    return k1, k2, k3, k4


def lambda_rhs_batched(v, y2b, *, max_block_rows=1024):
    """Batched RHS on a (2, B) state array: row 0 = a's, row 1 = r's.

    Returns a (2, B) array of [dadt; drdt].  B may be any positive size; it is
    padded internally to a lane-dense (2, R, 128) layout.
    """
    y2b = jnp.asarray(y2b, dtype=jnp.float32)
    assert y2b.ndim == 2 and y2b.shape[0] == 2
    batch = y2b.shape[1]

    # Rates depend only on the scalar v -> compute once, ship as SMEM scalars.
    k1, k2, k3, k4 = _rates_from_voltage(v)
    rates = jnp.stack([k1, k1 + k2, k4, k3 + k4]).astype(jnp.float32)  # (4,)

    # Pad batch to a multiple of 128 lanes, reshape to sublane-dense (2, R, 128).
    b_pad = -(-batch // _LANES) * _LANES
    rows = b_pad // _LANES
    if rows <= max_block_rows:
        block_rows = rows                       # single block spans the full row dim
        rows_pad = rows
    else:
        block_rows = max(8, (max_block_rows // 8) * 8)   # multiple of 8 sublanes
        rows_pad = -(-rows // block_rows) * block_rows
    total = rows_pad * _LANES
    y_padded = jnp.zeros((2, total), dtype=jnp.float32).at[:, :batch].set(y2b)
    y3 = y_padded.reshape(2, rows_pad, _LANES)

    grid = (rows_pad // block_rows,)
    out3 = pl.pallas_call(
        _lambda_kernel,
        out_shape=jax.ShapeDtypeStruct((2, rows_pad, _LANES), jnp.float32),
        grid_spec=pltpu.PrefetchScalarGridSpec(
            num_scalar_prefetch=0,
            grid=grid,
            in_specs=[
                pl.BlockSpec(memory_space=pltpu.MemorySpace.SMEM),           # rates (4,)
                pl.BlockSpec((2, block_rows, _LANES), lambda i: (0, i, 0)),  # state
            ],
            out_specs=pl.BlockSpec((2, block_rows, _LANES), lambda i: (0, i, 0)),
        ),
        compiler_params=pltpu.CompilerParams(
            dimension_semantics=("parallel",),
        ),
    )(rates, y3)
    return out3.reshape(2, total)[:, :batch]


def lambda_forward(t, y, v=None):
    """JAX wrapper mirroring Lambda.forward(t, y); returns shape (2,).

    Single-cell path uses plain jnp (pallas_call overhead >> ~12 flops); the
    Pallas kernel is exposed via lambda_rhs_batched for batched workloads.
    """
    del t  # t is only used (conceptually) to look up v via the voltage protocol
    if v is None:
        v = -80.0  # torch fallback: "except ValueError: v = tensor([-80])"
    y_arr = jnp.asarray(y, dtype=jnp.float32).reshape(1, 2)
    a, r = y_arr[0, 0], y_arr[0, 1]
    k1, k2, k3, k4 = _rates_from_voltage(v)
    dadt = k1 * (1.0 - a) - k2 * a
    drdt = -k3 * r + k4 * (1.0 - r)
    return jnp.stack([dadt, drdt])


def _reference_single(y, v):
    a, r = y[0, 0], y[0, 1]
    k1 = P1 * jnp.exp(P2 * v)
    k2 = P3 * jnp.exp(-P4 * v)
    k3 = P5 * jnp.exp(P6 * v)
    k4 = P7 * jnp.exp(-P8 * v)
    dadt = k1 * (1.0 - a) - k2 * a
    drdt = -k3 * r + k4 * (1.0 - r)
    return jnp.stack([dadt, drdt])


def _reference_batched(y2b, v):
    a, r = y2b[0], y2b[1]
    k1 = P1 * jnp.exp(P2 * v)
    k2 = P3 * jnp.exp(-P4 * v)
    k3 = P5 * jnp.exp(P6 * v)
    k4 = P7 * jnp.exp(-P8 * v)
    dadt = k1 * (1.0 - a) - k2 * a
    drdt = -k3 * r + k4 * (1.0 - r)
    return jnp.stack([dadt, drdt], axis=0)


if __name__ == "__main__":
    key = jax.random.PRNGKey(0)
    ka, kb, kc = jax.random.split(key, 3)

    # 1) Single-cell forward, exactly matching the torch module's shapes (jnp path).
    y = jax.random.uniform(ka, (1, 2), dtype=jnp.float32)  # gating vars in [0, 1)
    t = jnp.float32(0.0)
    v = jnp.float32(-80.0)  # fixed-form voltage fallback value
    out = jax.block_until_ready(lambda_forward(t, y, v))
    ref = _reference_single(y, v)
    assert out.shape == (2,)
    assert jnp.allclose(out, ref, rtol=1e-5, atol=1e-6), (out, ref)

    # 2) Batched Pallas path: 2048 cells -> (2, 16, 128) sublane-dense layout.
    #    max_block_rows=8 gives grid=(2,) so both v7x TensorCores get a block.
    B = 2048
    y_b = jax.random.uniform(kb, (2, B), dtype=jnp.float32)
    v_b = jnp.float32(-40.0)
    out_b = jax.block_until_ready(lambda_rhs_batched(v_b, y_b, max_block_rows=8))
    ref_b = _reference_batched(y_b, v_b)
    assert out_b.shape == (2, B)
    assert jnp.allclose(out_b, ref_b, rtol=1e-5, atol=1e-6), (out_b, ref_b)

    # 3) Ragged batch (not a multiple of 128) exercises the padding path (grid=(1,)).
    B2 = 300
    y_c = jax.random.uniform(kc, (2, B2), dtype=jnp.float32)
    out_c = jax.block_until_ready(lambda_rhs_batched(v, y_c))
    ref_c = _reference_batched(y_c, v)
    assert out_c.shape == (2, B2)
    assert jnp.allclose(out_c, ref_c, rtol=1e-5, atol=1e-6), (out_c, ref_c)

    print("KERNEL_OK")
</pallas_src>

<mosaic_0001>
module attributes {stable_mosaic.version = 11 : i64} {
  func.func @_lambda_kernel(%arg0: i32, %arg1: memref<4xf32, #tpu.memory_space<smem>>, %arg2: memref<2x8x128xf32, #tpu.memory_space<vmem>>, %arg3: memref<2x8x128xf32, #tpu.memory_space<vmem>>) attributes {dimension_semantics = [#tpu.dimension_semantics<parallel>], iteration_bounds = array<i64: 2>, scalar_prefetch = 0 : i64, scratch_operands = 0 : i64, tpu.core_type = #tpu.core_type<tc>, window_params = [{transform_indices = @transform_0, window_bounds = array<i64: 4>}, {transform_indices = @transform_1, window_bounds = array<i64: 2, 8, 128>}, {transform_indices = @transform_2, window_bounds = array<i64: 2, 8, 128>}]} {
    %c0 = arith.constant 0 : index
    %0 = memref.load %arg1[%c0] : memref<4xf32, #tpu.memory_space<smem>>
    %c1 = arith.constant 1 : index
    %1 = memref.load %arg1[%c1] : memref<4xf32, #tpu.memory_space<smem>>
    %c2 = arith.constant 2 : index
    %2 = memref.load %arg1[%c2] : memref<4xf32, #tpu.memory_space<smem>>
    %c3 = arith.constant 3 : index
    %3 = memref.load %arg1[%c3] : memref<4xf32, #tpu.memory_space<smem>>
    %c0_0 = arith.constant 0 : index
    %c0_1 = arith.constant 0 : index
    %c0_2 = arith.constant 0 : index
    %4 = vector.load %arg2[%c0_0, %c0_1, %c0_2] : memref<2x8x128xf32, #tpu.memory_space<vmem>>, vector<1x8x128xf32>
    %5 = vector.shape_cast %4 : vector<1x8x128xf32> to vector<8x128xf32>
    %6 = vector.broadcast %1 : f32 to vector<8x128xf32>
    %7 = arith.mulf %6, %5 : vector<8x128xf32>
    %8 = vector.broadcast %0 : f32 to vector<8x128xf32>
    %9 = arith.subf %8, %7 : vector<8x128xf32>
    %c0_3 = arith.constant 0 : index
    %c0_4 = arith.constant 0 : index
    %c0_5 = arith.constant 0 : index
    %10 = vector.load %arg3[%c0_3, %c0_4, %c0_5] : memref<2x8x128xf32, #tpu.memory_space<vmem>>, vector<1x8x128xf32>
    %11 = vector.shape_cast %10 : vector<1x8x128xf32> to vector<8x128xf32>
    %12 = vector.shape_cast %9 : vector<8x128xf32> to vector<1x8x128xf32>
    tpu.vector_store %arg3[%c0_3, %c0_4, %c0_5], %12 {strides = array<i32>} : memref<2x8x128xf32, #tpu.memory_space<vmem>>, vector<1x8x128xf32>,
    %c1_6 = arith.constant 1 : index
    %c0_7 = arith.constant 0 : index
    %c0_8 = arith.constant 0 : index
    %13 = vector.load %arg2[%c1_6, %c0_7, %c0_8] : memref<2x8x128xf32, #tpu.memory_space<vmem>>, vector<1x8x128xf32>
    %14 = vector.shape_cast %13 : vector<1x8x128xf32> to vector<8x128xf32>
    %15 = vector.broadcast %3 : f32 to vector<8x128xf32>
    %16 = arith.mulf %15, %14 : vector<8x128xf32>
    %17 = vector.broadcast %2 : f32 to vector<8x128xf32>
    %18 = arith.subf %17, %16 : vector<8x128xf32>
    %c1_9 = arith.constant 1 : index
    %c0_10 = arith.constant 0 : index
    %c0_11 = arith.constant 0 : index
    %19 = vector.load %arg3[%c1_9, %c0_10, %c0_11] : memref<2x8x128xf32, #tpu.memory_space<vmem>>, vector<1x8x128xf32>
    %20 = vector.shape_cast %19 : vector<1x8x128xf32> to vector<8x128xf32>
    %21 = vector.shape_cast %18 : vector<8x128xf32> to vector<1x8x128xf32>
    tpu.vector_store %arg3[%c1_9, %c0_10, %c0_11], %21 {strides = array<i32>} : memref<2x8x128xf32, #tpu.memory_space<vmem>>, vector<1x8x128xf32>,
    return
  }
  func.func @transform_0(%arg0: i32) -> i32 {
    %c0_i32 = arith.constant 0 : i32
    %c0_i32_0 = arith.constant 0 : i32
    return %c0_i32 : i32
  }
  func.func @transform_1(%arg0: i32) -> (i32, i32, i32) {
    %c0_i32 = arith.constant 0 : i32
    %c0_i32_0 = arith.constant 0 : i32
    %c0_i32_1 = arith.constant 0 : i32
    return %c0_i32, %arg0, %c0_i32_0 : i32, i32, i32
  }
  func.func @transform_2(%arg0: i32) -> (i32, i32, i32) {
    %c0_i32 = arith.constant 0 : i32
    %c0_i32_0 = arith.constant 0 : i32
    %c0_i32_1 = arith.constant 0 : i32
    return %c0_i32, %arg0, %c0_i32_0 : i32, i32, i32
  }
}

</mosaic_0001>

<bundles_post_ra>
// kernel: tpu_custom_call.1
= control target key start
LH: loop header
LB: loop body
LE: loop exit
PB: predicated region body
PF: predicated region fallthrough
CT: control target
= control target key end

     0   :  { %7 = vsyncpa [#allocation5], 0  ;;  %s658_s0 = inlined_call_operand.hbm [shape: f32[4], index: 0, kind: input, shape index: {}]   ;;  %s659_s1 = inlined_call_operand.hbm [shape: f32[2,16,128], index: 1, kind: input, shape index: {}]   ;;  %s660_s2 = inlined_call_operand.hbm [shape: f32[2,16,128], index: 2, kind: output, shape index: {}]  }
   0x1   :  { %8 = vsyncpa [#allocation3], 0 }
   0x2   :  { %10 = vsyncpa [#allocation3 + $0x1], 0 }
   0x3   :  { %11 = vsyncpa [#allocation4], 0 }
   0x4   :  { %13 = vsyncpa [#allocation4 + $0x1], 0  ;;  %s516_s9 = smov 0   ;;  %s518_s10 = smov 0  }
   0x5   :  { %s520_s11 = smov 0   ;;  %s522_s12 = smov 0  }
   0x6 LB: > { %s537_s13 = sadd.s32 4294967295, %s492_s12   ;;  %s295_s14 = sadd.s32 4294967294, %s492_s12   ;;  %s492_s12 = sphi %s522_s12, %s671_s12   ;;  %s488_s11 = sphi %s520_s11, %s670_s11   ;;  %s484_s10 = sphi %s518_s10, %s669_s10   ;;  %s480_s9 = sphi %s516_s9, %s668_s9  }
   0x7   : > { %s541_s15 = sadd.s32 1, %s492_s12   ;;  %s47_s16 = sadd.s32 1, %s488_s11 }
   0x8   : > { %s44_s17 = ssub.s32 %s492_s12, %s541_s15  ;;  %p54_p0 = scmp.ne.s32.totalorder %s488_s11, %s484_s10 }
   0x9   : > { %p45_p1 = scmp.eq.s32.totalorder %s44_s17, 0  ;;  %p55_p2 = scmp.eq.s32.totalorder %s492_s12, 0 }
   0xa   : > { %p60_p3 = scmp.ne.s32.totalorder %s484_s10, %s480_s9  ;;  %p61_p4 = scmp.eq.s32.totalorder %s537_s13, 0 }
   0xb   : > { %s553_s18 = scalar_select %p45_p1, %s488_s11, %s47_s16  }
   0xc   : > { %p555_p5 = por %p55_p2, %p54_p0  ;;  %p561_p6 = por %p61_p4, %p60_p3 }
   0xd   : > { %p84_p7 = scmp.eq.s32.totalorder %s537_s13, 1  ;;  %p90_p8 = scmp.eq.s32.totalorder %s295_s14, 1 }
   0xe   : > { %p296_p9 = scmp.ge.s32.totalorder %s492_s12, 1  ;;  %p97_p10 = scmp.lt.s32.totalorder %s492_s12, 3 }
   0xf   : > { %p568_p11 = por %p84_p7, %p54_p0  ;;  %p572_p12 = por %p90_p8, %p60_p3 }
  0x10   : > { %p576_p13 = pnand %p296_p9, %p97_p10  ;;  %s109_s26 = sshll.u32 %s658_s0, 4  ;;  %s110_s26 = int_to_ptr.hbm [resolvable:$true] %s109_s26 }
  0x11   : > { %p335_p2 = scmp.lt.s32.totalorder %s492_s12, 2  ;;  %s120_s27 = sand.u32 1, %s488_s11  }
  0x12   : > { %p322_p1 = pneg %p576_p13  ;;  %s299_s29 = sshll.u32 %s120_s27, 4 }
  0x13   : > { %p592_p3 = pnand %p335_p2, %p555_p5  ;;  %s494_s30 = smov [#allocation2]  }
  0x14   : > { %p323_p7 = pnand %p322_p1, %p61_p4  ;;  %s300_s3 = sshll.u32 %s492_s12, 3 }
  0x15   : > { %s124_s4 = scalar_lea.vmem [#allocation6], %s299_s29  ;;  %s128_s8 = scalar_lea.hbm %s659_s1, %s300_s3 }
  0x16   : > { %325 = dma.hbm_to_smem (!%p323_p7), %s110_s26, 16, %s494_s30, [#allocation5]  }
  0x17   : > { %s131_s5 = sshll.u32 %s124_s4, 4  ;;  %s129_s14 = sshll.u32 %s128_s8, 4  ;;  %s132_s5 = int_to_ptr.vmem [resolvable:$true] %s131_s5  ;;  %s130_s14 = int_to_ptr.hbm [resolvable:$true] %s129_s14 }
  0x18   : > { %s121_s16 = scalar_lea.sflag [#allocation3], %s120_s27  ;;  %s392_s17 = sshra.s32 %s130_s14, 4  ;;  %s393_s17 = int_to_ptr.hbm [resolvable:$true] %s392_s17 }
  0x19   : > { %s394_s19 = scalar_lea.hbm %s393_s17, 16  ;;  %p396_p8 = pneg %p592_p3 }
  0x1a   : > { %p395_p5 = scmp.ne.s32.totalorder %s393_s17, %s394_s19  ;;  %s399_s26 = scalar_lea.hbm %s659_s1, 32 }
  0x1b   : > { %p400_p1 = scmp.lt.s32.totalorder %s393_s17, %s659_s1  ;;  %p401_p2 = scmp.lt.s32.totalorder %s399_s26, %s394_s19 }
  0x1c   : > { %p397_p9 = pnand %p396_p8, %p395_p5 }
  0x1d   : > { %p402_p7 = por %p401_p2, %p400_p1 }
  0x1e   : > { %p398_p10 = pneg %p397_p9 }
  0x20   : > { %p403_p0 = pnand %p402_p7, %p398_p10 }
  0x22   : > { %406 = shalt.err (!%p403_p0)
}
  0x23   : > { %s495_s27 = smov 256   ;;  %s496_s3 = smov 128  }
  0x24   : > { %s497_s4 = smov 8   ;;  %143 = sbr.rel (%p576_p13) target bundleno = 67 (0x43), region = 28 }
  0x25   : > { %329 = dma.hbm_to_vmem [thread:$0]  (!%p592_p3), %s130_s14, 256, %s132_s5, %s121_s16, %s495_s27, %s496_s3, %s497_s4  }
  0x29   : > { %467 = dma.done.wait (%p61_p4), [#allocation5], 16  }
  0x2a   : > { %469 = vsyncadd (%p61_p4), [#allocation5], 4294967280  ;;  %s617_s6 = sand.u32 1, %s484_s10  }
  0x2b   : > { %s303_s7 = sshll.u32 %s617_s6, 4  ;;  %s151_s8 = scalar_lea.sflag [#allocation3], %s617_s6 }
  0x2c   : > { %s154_s17 = scalar_lea.vmem [#allocation6], %s303_s7 }
  0x2d   : > { %471 = dma.done.wait (%p561_p6), %s151_s8, 256  }
  0x2e   : > { %473 = vsyncadd (%p561_p6), %s151_s8, 4294967040 }
  0x2f   : > { %160 = sfence }
  0x30   : > { %s177_s23 = sld [smem:[#allocation2]]  ;;  %s311_s16 = sshll.u32 %s537_s13, 3  ;;  %v181_v0 = vld [vmem:[%s154_s17] sm:$0xff]  ;;  %v308_v3 = vld [vmem:[%s154_s17 + $0x8] sm:$0xff] }
  0x31   : > { %s305_s28 = sld [smem:[#allocation2 + $0x1]]  ;;  %s206_s25 = scalar_lea.hbm %s660_s2, %s311_s16 }
  0x32   : > { %s306_s5 = sld [smem:[#allocation2 + $0x2]]  ;;  %s176_s26 = scalar_lea.vmem [#allocation7], %s303_s7 }
  0x33   : > { %s307_s14 = sld [smem:[#allocation2 + $0x3]]  ;;  %s207_s29 = sshll.u32 %s176_s26, 4  ;;  %s208_s29 = int_to_ptr.vmem [resolvable:$true] %s207_s29 }
  0x34   : > { %s209_s20 = sshll.u32 %s206_s25, 4  ;;  %s196_s13 = scalar_lea.sflag [#allocation4], %s617_s6  ;;  %s210_s20 = int_to_ptr.hbm [resolvable:$true] %s209_s20 }
  0x35   : > { %s436_s30 = sshra.s32 %s210_s20, 4  ;;  %s442_s7 = scalar_lea.hbm %s660_s2, 32  ;;  %s437_s30 = int_to_ptr.hbm [resolvable:$true] %s436_s30 }
  0x36   : > { %v184_v2 = vstv %s177_s23  ;;  %s438_s27 = scalar_lea.hbm %s437_s30, 16  ;;  %p443_p0 = scmp.lt.s32.totalorder %s437_s30, %s660_s2 }
  0x37   : > { %v182_v1 = vstv %s305_s28  ;;  %p439_p4 = scmp.ne.s32.totalorder %s437_s30, %s438_s27  ;;  %p444_p3 = scmp.lt.s32.totalorder %s442_s7, %s438_s27 }
  0x38   : > { %v183_v4 = vmul.f32 %v182_v1, %v181_v0  ;;  %v191_v6 = vstv %s306_s5 }
  0x39   : > { %v189_v5 = vstv %s307_s14  ;;  %p440_p6 = pnand %p439_p4, %p568_p11  ;;  %p445_p5 = por %p444_p3, %p443_p0 }
  0x3a   : > { %v185_v7 = vsub.f32 %v184_v2, %v183_v4  ;;  %v190_v8 = vmul.f32 %v308_v3, %v189_v5 }
  0x3b   : > { %p441_p13 = pneg %p440_p6 }
  0x3c   : > { %186 = vst [vmem:[%s176_s26] sm:$0xff] %v185_v7  ;;  %v192_v9 = vsub.f32 %v191_v6, %v190_v8 }
  0x3d   : > { %p446_p8 = pnand %p445_p5, %p441_p13 }
  0x3e   : > { %309 = vst [vmem:[%s176_s26 + $0x8] sm:$0xff] %v192_v9 }
  0x3f   : > { %449 = shalt.err (!%p446_p8)
}
  0x40   : > { %s498_s6 = smov 128   ;;  %s499_s23 = smov 256  }
  0x41   : > { %s500_s28 = smov 8  }
  0x42   : > { %320 = dma.vmem_to_hbm [thread:$0]  (%p568_p11), %s208_s29, 256, %s210_s20, %s196_s13, %s498_s6, %s499_s23, %s500_s28  }
  0x43 PF: > { %s224_s5 = sand.u32 1, %s480_s9   ;;  %p667_p9 = scmp.ge.s32.totalorder %s492_s12, 2 }
  0x44   : > { %s225_s14 = scalar_lea.sflag [#allocation4], %s224_s5 }
  0x45   : > { %p331_p10 = pnand %p667_p9, %p572_p12 }
  0x47   : > { %p332_p1 = pneg %p331_p10 }
  0x49   : > { %475 = dma.done.wait (%p332_p1), %s225_s14, 256  }
  0x4a   : > { %477 = vsyncadd (%p332_p1), %s225_s14, 4294967040  ;;  %p16_p2 = scmp.ge.s32.totalorder %s541_s15, 4   ;;  %s668_s9 = smov %s484_s10 }
  0x4b   : > { %s669_s10 = smov %s488_s11  ;;  %s670_s11 = smov %s553_s18 }
  0x4c   : > { %s671_s12 = smov %s541_s15  ;;  %18 = sbr.rel (!%p16_p2) target bundleno = 6 (0x6), region = 80 }
  0x51   :  { %231 = vsyncpa [#allocation3], 1 }
  0x52   :  { %233 = vsyncpa [#allocation3 + $0x1], 1 }
  0x53   :  { %234 = vsyncpa [#allocation4], 1 }
  0x54   :  { %236 = vsyncpa [#allocation4 + $0x1], 1 }
  0x55   :  { %237 = vsyncpa [#allocation5], 1 }
  0x56   :  { %239 = vsyncpa [#allocation5 + $0x1], 1 }

</bundles_post_ra>
